<compile_context>
chip_gen: v7x
topology: tpu7x:2x2x1
jax: 0.10.0
libtpu: 0.0.40
codegen_flags: <defaults>
</compile_context>

<pallas_src>
import functools
import math

import jax
import jax.numpy as jnp
from jax.experimental import pallas as pl
from jax.experimental.pallas import tpu as pltpu


def _round_up(x, m):
    return ((x + m - 1) // m) * m


# ----------------------------------------------------------------------------
# Capability / hardware queries (host side, cached)
# ----------------------------------------------------------------------------
@functools.lru_cache(maxsize=None)
def _vmem_capacity_bytes():
    try:
        info = pltpu.get_tpu_info()
        for attr in ("vmem_capacity_bytes", "vmem_size_bytes", "vmem_bytes"):
            v = getattr(info, attr, None)
            if v:
                return int(v)
    except Exception:
        pass
    return 64 * 1024 * 1024  # conservative: v7x per-TensorCore VMEM


@functools.lru_cache(maxsize=None)
def _single_buffer_supported():
    """Probe whether pipeline_mode=pl.Buffered(1) lowers on this JAX/TPU."""
    try:
        def k(x_ref, o_ref):
            o_ref[...] = x_ref[...]

        x = jnp.zeros((8, 128), jnp.float32)
        f = pl.pallas_call(
            k,
            out_shape=jax.ShapeDtypeStruct((8, 128), jnp.float32),
            grid=(1,),
            in_specs=[pl.BlockSpec((8, 128), lambda i: (0, 0),
                                   pipeline_mode=pl.Buffered(1))],
            out_specs=pl.BlockSpec((8, 128), lambda i: (0, 0)),
        )
        jax.block_until_ready(f(x))
        return True
    except Exception:
        return False


def _resident_spec(shape):
    """BlockSpec for a grid-invariant (weight/bias) operand, single-buffered
    when supported so it only occupies one VMEM copy."""
    idx = lambda i: (0,) * len(shape)
    if _single_buffer_supported():
        return pl.BlockSpec(shape, idx, pipeline_mode=pl.Buffered(1))
    return pl.BlockSpec(shape, idx)


# ----------------------------------------------------------------------------
# Tile-size heuristics
# ----------------------------------------------------------------------------
def _pick_tm(B, pad, capacity):
    """Batch tile: minimal padding waste, MXU-friendly width for big batches,
    >= 2 grid steps when the batch permits (v7x megacore), VMEM budgeted."""
    B = max(B, 1)
    if B <= 128:
        return _round_up(B, 8)

    cands = {128, 256, 384, 512}
    for k in range(1, 9):
        cands.add(min(512, _round_up(-(-B // k), 8)))

    w_resident = (sum(ip * op * 2 for ip, op in zip(pad, pad[1:]))
                  + sum(op * 4 for op in pad[1:]))
    budget = int(0.7 * capacity)

    best = None
    for tm in sorted(cands, reverse=True):
        if tm < 8:
            continue
        # x tile (bf16, 2 bufs) + out tile (f32, 2 bufs) + fused activations.
        act = tm * (2 * pad[0] * 2 + 2 * pad[-1] * 4 + 10 * max(pad))
        if w_resident + act > budget:
            continue
        b_pad = _round_up(B, tm)
        n_tiles = b_pad // tm
        key = (b_pad - B, 0 if n_tiles >= 2 else 1, -tm)
        if best is None or key < best[0]:
            best = (key, tm)
    return best[1] if best is not None else 128


def _divisor_tile(dim):
    for t in (512, 256, 128):
        if dim % t == 0:
            return t
    return 128


# ----------------------------------------------------------------------------
# Kernels
# ----------------------------------------------------------------------------
def _mlp_kernel(x_ref, *refs):
    """Fused whole-MLP kernel: all layers computed with activations resident
    in vregs/VMEM.  Weights are bf16 pre-scaled by 0.5; biases f32 pre-scaled
    by 0.5, so sigmoid(z) == 0.5*tanh(z') + 0.5 with z' = h @ w' + b'."""
    *param_refs, o_ref = refs
    h = x_ref[...]                                  # bf16 input tile
    n_layers = len(param_refs) // 2
    for l in range(n_layers):                       # fully unrolled
        w = param_refs[2 * l][...]                  # bf16 (pre-scaled 0.5)
        b = param_refs[2 * l + 1][...]              # f32  (pre-scaled 0.5)
        z = jnp.dot(h, w, preferred_element_type=jnp.float32) + b
        s = 0.5 * jnp.tanh(z) + 0.5                 # f32 sigmoid (EUP tanh)
        h = s.astype(jnp.bfloat16) if l < n_layers - 1 else s
    o_ref[...] = h.astype(o_ref.dtype)


def _layer_kernel(x_ref, w_ref, b_ref, o_ref, acc_ref):
    """Fallback per-layer kernel: K-tiled matmul with f32 accumulator,
    bias + sigmoid applied on the last K step."""
    @pl.when(pl.program_id(2) == 0)
    def _():
        acc_ref[...] = jnp.zeros_like(acc_ref)

    acc_ref[...] += jnp.dot(x_ref[...], w_ref[...],
                            preferred_element_type=jnp.float32)

    @pl.when(pl.program_id(2) == pl.num_programs(2) - 1)
    def _():
        z = acc_ref[...] + b_ref[...]               # already pre-scaled by 0.5
        o_ref[...] = (0.5 * jnp.tanh(z) + 0.5).astype(o_ref.dtype)


# ----------------------------------------------------------------------------
# Forward implementations
# ----------------------------------------------------------------------------
def _forward_fused(x, *flat_params, sizes, capacity):
    sizes = list(sizes)
    pad = [_round_up(s, 128) for s in sizes]        # lane-dense feature dims
    B, in0 = x.shape

    tm = _pick_tm(B, pad, capacity)
    B_pad = _round_up(B, tm)
    grid_m = B_pad // tm

    # Zero-padded bf16 input (padded lanes/rows contribute exactly 0).
    x_pad = jnp.zeros((B_pad, pad[0]), jnp.bfloat16)
    x_pad = x_pad.at[:B, :in0].set(x.astype(jnp.bfloat16))

    in_specs = [pl.BlockSpec((tm, pad[0]), lambda i: (i, 0))]
    for ip, op in zip(pad, pad[1:]):
        in_specs.append(_resident_spec((ip, op)))   # weight (bf16)
        in_specs.append(_resident_spec((1, op)))    # bias   (f32)
    out_specs = pl.BlockSpec((tm, pad[-1]), lambda i: (i, 0))

    w_bytes = sum(ip * op * 2 for ip, op in zip(pad, pad[1:]))
    b_bytes = sum(op * 4 for op in pad[1:])
    nbuf = 1 if _single_buffer_supported() else 2
    vmem_need = (nbuf * (w_bytes + b_bytes)
                 + 2 * tm * pad[0] * 2              # x tile, double-buffered
                 + 2 * tm * pad[-1] * 4             # out tile, double-buffered
                 + tm * max(pad) * 12)              # fused activation slabs
    vmem_limit = min(max(int(vmem_need * 1.5), 16 << 20), int(0.9 * capacity))

    flops = sum(2 * B_pad * ip * op for ip, op in zip(pad, pad[1:]))
    transcendentals = sum(B_pad * op for op in pad[1:])
    bytes_accessed = (2 * B_pad * pad[0] + 4 * B_pad * pad[-1]
                      + w_bytes + b_bytes)

    out_pad = pl.pallas_call(
        _mlp_kernel,
        out_shape=jax.ShapeDtypeStruct((B_pad, pad[-1]), jnp.float32),
        grid=(grid_m,),
        in_specs=in_specs,
        out_specs=out_specs,
        compiler_params=pltpu.CompilerParams(
            dimension_semantics=("parallel",),
            vmem_limit_bytes=vmem_limit,
        ),
        cost_estimate=pl.CostEstimate(
            flops=flops,
            transcendentals=transcendentals,
            bytes_accessed=bytes_accessed,
        ),
    )(x_pad, *flat_params)

    # TODO(synk): consumers that tolerate the lane-padded slab can skip this
    # slice (it is an extra HBM->HBM copy of the output).
    return out_pad[:B, :sizes[-1]]


def _forward_layered(x, *flat_params, sizes, capacity):
    """Fallback: weights too large to keep fully resident in VMEM.  Each layer
    is a tiled matmul+bias+sigmoid kernel; activations round-trip HBM in bf16."""
    sizes = list(sizes)
    pad = [_round_up(s, 128) for s in sizes]
    B, in0 = x.shape
    n_layers = len(sizes) - 1

    tm = _pick_tm(B, pad, capacity)
    B_pad = _round_up(B, tm)

    h = jnp.zeros((B_pad, pad[0]), jnp.bfloat16)
    h = h.at[:B, :in0].set(x.astype(jnp.bfloat16))

    for l in range(n_layers):
        w = flat_params[2 * l]
        b = flat_params[2 * l + 1]
        K, N = w.shape
        tk = _divisor_tile(K)
        tn = _divisor_tile(N)
        out_dtype = jnp.float32 if l == n_layers - 1 else jnp.bfloat16
        vmem_need = (2 * tm * tk * 2 + 2 * tk * tn * 2 + 2 * tn * 4
                     + 2 * tm * tn * 4 + tm * tn * 4)
        vmem_limit = min(max(int(vmem_need * 2), 16 << 20),
                         int(0.9 * capacity))
        h = pl.pallas_call(
            _layer_kernel,
            out_shape=jax.ShapeDtypeStruct((B_pad, N), out_dtype),
            grid=(B_pad // tm, N // tn, K // tk),
            in_specs=[pl.BlockSpec((tm, tk), lambda i, j, k: (i, k)),
                      pl.BlockSpec((tk, tn), lambda i, j, k: (k, j)),
                      pl.BlockSpec((1, tn), lambda i, j, k: (0, j))],
            out_specs=pl.BlockSpec((tm, tn), lambda i, j, k: (i, j)),
            scratch_shapes=[pltpu.VMEM((tm, tn), jnp.float32)],
            compiler_params=pltpu.CompilerParams(
                dimension_semantics=("parallel", "parallel", "arbitrary"),
                vmem_limit_bytes=vmem_limit,
            ),
        )(h, w, b)

    return h[:B, :sizes[-1]]


# ----------------------------------------------------------------------------
# Module wrapper
# ----------------------------------------------------------------------------
class NetworkPallas:
    """JAX/Pallas equivalent of the PyTorch Network(sizes) module."""

    def __init__(self, sizes, key, force_layered=False):
        self.sizes = list(sizes)
        self.capacity = _vmem_capacity_bytes()
        _single_buffer_supported()   # warm the capability probe outside jit

        self.params = []   # true (W_T (in,out) f32, b (out,) f32) for reference
        self.padded = []   # padded (0.5*W_T bf16 (in_p,out_p), 0.5*b f32 (1,out_p))
        pad = [_round_up(s, 128) for s in self.sizes]
        for (in_, out), (in_p, out_p) in zip(zip(sizes, sizes[1:]),
                                             zip(pad, pad[1:])):
            key, kw, kb = jax.random.split(key, 3)
            # Match torch.nn.Linear default init: U(-1/sqrt(in), 1/sqrt(in))
            bound = 1.0 / math.sqrt(in_)
            w = jax.random.uniform(kw, (out, in_), jnp.float32, -bound, bound)
            b = jax.random.uniform(kb, (out,), jnp.float32, -bound, bound)
            w_t = jnp.transpose(w)                               # (in, out)
            self.params.append((w_t, b))

            # Pre-scale by 0.5 (exact power-of-2 scaling) so the kernel's
            # sigmoid is 0.5*tanh(z') + 0.5; store weights bf16 (MXU-native).
            w_pad = jnp.zeros((in_p, out_p), jnp.bfloat16)
            w_pad = w_pad.at[:in_, :out].set((0.5 * w_t).astype(jnp.bfloat16))
            b_pad = jnp.zeros((1, out_p), jnp.float32)
            b_pad = b_pad.at[0, :out].set(0.5 * b)
            self.padded.append((w_pad, b_pad))

        w_resident = sum(int(wp.size) * 2 + int(bp.size) * 4
                         for wp, bp in self.padded)
        nbuf = 1 if _single_buffer_supported() else 2
        self.use_fused = ((not force_layered)
                          and nbuf * w_resident <= int(0.6 * self.capacity))
        impl = _forward_fused if self.use_fused else _forward_layered
        self._forward = jax.jit(functools.partial(
            impl, sizes=tuple(self.sizes), capacity=int(self.capacity)))

    def __call__(self, x):
        flat = []
        for w_pad, b_pad in self.padded:
            flat.append(w_pad)
            flat.append(b_pad)
        return self._forward(x, *flat)


# ----------------------------------------------------------------------------
# Pure-JAX references for the self-test
# ----------------------------------------------------------------------------
def _reference_f32(x, params):
    h = x
    for w_t, b in params:
        h = jax.nn.sigmoid(h @ w_t + b)
    return h


def _reference_bf16(x, params):
    """Emulates the kernel numerics: bf16 MXU operands, f32 accumulation,
    tanh-based sigmoid, bf16 activations between layers."""
    h = x.astype(jnp.float32)
    n = len(params)
    for l, (w_t, b) in enumerate(params):
        z = jnp.dot(h.astype(jnp.bfloat16), w_t.astype(jnp.bfloat16),
                    preferred_element_type=jnp.float32) + b
        h = 0.5 * jnp.tanh(0.5 * z) + 0.5
        if l < n - 1:
            h = h.astype(jnp.bfloat16).astype(jnp.float32)
    return h


if __name__ == "__main__":
    key = jax.random.PRNGKey(0)
    sizes = [32, 64, 16]          # `sizes` argument of Network(sizes)
    batch = 8

    key, kx, kp = jax.random.split(key, 3)
    x = jax.random.normal(kx, (batch, sizes[0]), jnp.float32)

    # Primary (fused) path.
    net = NetworkPallas(sizes, kp)
    y = jax.block_until_ready(net(x))
    assert y.shape == (batch, sizes[-1])

    y_bf16 = _reference_bf16(x, net.params)
    y_f32 = _reference_f32(x, net.params)
    assert jnp.allclose(y, y_bf16, atol=1e-3, rtol=1e-3)   # matches kernel numerics
    assert jnp.allclose(y, y_f32, atol=2e-2, rtol=2e-2)    # bf16 vs f32 semantics

    # Fallback (streamed / per-layer tiled) path — same params, same answer.
    net_layered = NetworkPallas(sizes, kp, force_layered=True)
    y_layered = jax.block_until_ready(net_layered(x))
    assert y_layered.shape == (batch, sizes[-1])
    assert jnp.allclose(y_layered, y_bf16, atol=1e-3, rtol=1e-3)

    print("KERNEL_OK")
</pallas_src>

<mosaic_0001>
module attributes {stable_mosaic.version = 11 : i64} {
  func.func @k(%arg0: i32, %arg1: memref<8x128xf32, #tpu.memory_space<vmem>>, %arg2: memref<8x128xf32, #tpu.memory_space<vmem>>) attributes {dimension_semantics = [#tpu.dimension_semantics<arbitrary>], iteration_bounds = array<i64: 1>, scalar_prefetch = 0 : i64, scratch_operands = 0 : i64, tpu.core_type = #tpu.core_type<tc>, window_params = [{pipeline_mode = #tpu.pipeline_mode<synchronous>, transform_indices = @transform_0, window_bounds = array<i64: 8, 128>}, {pipeline_mode = #tpu.pipeline_mode<synchronous>, transform_indices = @transform_1, window_bounds = array<i64: 8, 128>}]} {
    %c0 = arith.constant 0 : index
    %c0_0 = arith.constant 0 : index
    %0 = vector.load %arg1[%c0, %c0_0] : memref<8x128xf32, #tpu.memory_space<vmem>>, vector<8x128xf32>
    %c0_1 = arith.constant 0 : index
    %c0_2 = arith.constant 0 : index
    %1 = vector.load %arg2[%c0_1, %c0_2] : memref<8x128xf32, #tpu.memory_space<vmem>>, vector<8x128xf32>
    tpu.vector_store %arg2[%c0_1, %c0_2], %0 {strides = array<i32>} : memref<8x128xf32, #tpu.memory_space<vmem>>, vector<8x128xf32>,
    return
  }
  func.func @transform_0(%arg0: i32) -> (i32, i32) {
    %c0_i32 = arith.constant 0 : i32
    %c0_i32_0 = arith.constant 0 : i32
    %c0_i32_1 = arith.constant 0 : i32
    return %c0_i32, %c0_i32_0 : i32, i32
  }
  func.func @transform_1(%arg0: i32) -> (i32, i32) {
    %c0_i32 = arith.constant 0 : i32
    %c0_i32_0 = arith.constant 0 : i32
    %c0_i32_1 = arith.constant 0 : i32
    return %c0_i32, %c0_i32_0 : i32, i32
  }
}

module attributes {stable_mosaic.version = 11 : i64} {
  func.func @_mlp_kernel(%arg0: i32, %arg1: memref<8x128xbf16, #tpu.memory_space<vmem>>, %arg2: memref<128x128xbf16, #tpu.memory_space<vmem>>, %arg3: memref<1x128xf32, #tpu.memory_space<vmem>>, %arg4: memref<128x128xbf16, #tpu.memory_space<vmem>>, %arg5: memref<1x128xf32, #tpu.memory_space<vmem>>, %arg6: memref<8x128xf32, #tpu.memory_space<vmem>>) attributes {dimension_semantics = [#tpu.dimension_semantics<parallel>], iteration_bounds = array<i64: 1>, scalar_prefetch = 0 : i64, scratch_operands = 0 : i64, tpu.core_type = #tpu.core_type<tc>, window_params = [{transform_indices = @transform_0, window_bounds = array<i64: 8, 128>}, {pipeline_mode = #tpu.pipeline_mode<synchronous>, transform_indices = @transform_1, window_bounds = array<i64: 128, 128>}, {pipeline_mode = #tpu.pipeline_mode<synchronous>, transform_indices = @transform_2, window_bounds = array<i64: 1, 128>}, {pipeline_mode = #tpu.pipeline_mode<synchronous>, transform_indices = @transform_3, window_bounds = array<i64: 128, 128>}, {pipeline_mode = #tpu.pipeline_mode<synchronous>, transform_indices = @transform_4, window_bounds = array<i64: 1, 128>}, {transform_indices = @transform_5, window_bounds = array<i64: 8, 128>}]} {
    %c0 = arith.constant 0 : index
    %c0_0 = arith.constant 0 : index
    %0 = vector.load %arg1[%c0, %c0_0] : memref<8x128xbf16, #tpu.memory_space<vmem>>, vector<8x128xbf16>
    %c0_1 = arith.constant 0 : index
    %c0_2 = arith.constant 0 : index
    %1 = vector.load %arg2[%c0_1, %c0_2] : memref<128x128xbf16, #tpu.memory_space<vmem>>, vector<128x128xbf16>
    %c0_3 = arith.constant 0 : index
    %c0_4 = arith.constant 0 : index
    %2 = vector.load %arg3[%c0_3, %c0_4] : memref<1x128xf32, #tpu.memory_space<vmem>>, vector<1x128xf32>
    %cst = arith.constant dense<0.000000e+00> : vector<8x128xf32>
    %3 = tpu.matmul %0, %1, %cst {dimension_numbers = #tpu.dot_dimension_numbers<[1], [0], [0], [1], [0, 0, 1, 1], [], []>} : vector<8x128xbf16>, vector<128x128xbf16>, vector<8x128xf32> -> vector<8x128xf32>
    %4 = vector.broadcast %2 : vector<1x128xf32> to vector<8x128xf32>
    %5 = arith.addf %3, %4 : vector<8x128xf32>
    %6 = math.tanh %5 : vector<8x128xf32>
    %cst_5 = arith.constant 5.000000e-01 : f32
    %7 = vector.broadcast %cst_5 : f32 to vector<8x128xf32>
    %8 = arith.mulf %7, %6 : vector<8x128xf32>
    %cst_6 = arith.constant 5.000000e-01 : f32
    %9 = vector.broadcast %cst_6 : f32 to vector<8x128xf32>
    %10 = arith.addf %8, %9 : vector<8x128xf32>
    %11 = arith.truncf %10 : vector<8x128xf32> to vector<8x128xbf16>
    %c0_7 = arith.constant 0 : index
    %c0_8 = arith.constant 0 : index
    %12 = vector.load %arg4[%c0_7, %c0_8] : memref<128x128xbf16, #tpu.memory_space<vmem>>, vector<128x128xbf16>
    %c0_9 = arith.constant 0 : index
    %c0_10 = arith.constant 0 : index
    %13 = vector.load %arg5[%c0_9, %c0_10] : memref<1x128xf32, #tpu.memory_space<vmem>>, vector<1x128xf32>
    %cst_11 = arith.constant dense<0.000000e+00> : vector<8x128xf32>
    %14 = tpu.matmul %11, %12, %cst_11 {dimension_numbers = #tpu.dot_dimension_numbers<[1], [0], [0], [1], [0, 0, 1, 1], [], []>} : vector<8x128xbf16>, vector<128x128xbf16>, vector<8x128xf32> -> vector<8x128xf32>
    %15 = vector.broadcast %13 : vector<1x128xf32> to vector<8x128xf32>
    %16 = arith.addf %14, %15 : vector<8x128xf32>
    %17 = math.tanh %16 : vector<8x128xf32>
    %cst_12 = arith.constant 5.000000e-01 : f32
    %18 = vector.broadcast %cst_12 : f32 to vector<8x128xf32>
    %19 = arith.mulf %18, %17 : vector<8x128xf32>
    %cst_13 = arith.constant 5.000000e-01 : f32
    %20 = vector.broadcast %cst_13 : f32 to vector<8x128xf32>
    %21 = arith.addf %19, %20 : vector<8x128xf32>
    %c0_14 = arith.constant 0 : index
    %c0_15 = arith.constant 0 : index
    %22 = vector.load %arg6[%c0_14, %c0_15] : memref<8x128xf32, #tpu.memory_space<vmem>>, vector<8x128xf32>
    tpu.vector_store %arg6[%c0_14, %c0_15], %21 {strides = array<i32>} : memref<8x128xf32, #tpu.memory_space<vmem>>, vector<8x128xf32>,
    return
  }
  func.func @transform_0(%arg0: i32) -> (i32, i32) {
    %c0_i32 = arith.constant 0 : i32
    %c0_i32_0 = arith.constant 0 : i32
    return %arg0, %c0_i32 : i32, i32
  }
  func.func @transform_1(%arg0: i32) -> (i32, i32) {
    %c0_i32 = arith.constant 0 : i32
    %c0_i32_0 = arith.constant 0 : i32
    %c0_i32_1 = arith.constant 0 : i32
    return %c0_i32, %c0_i32_0 : i32, i32
  }
  func.func @transform_2(%arg0: i32) -> (i32, i32) {
    %c0_i32 = arith.constant 0 : i32
    %c0_i32_0 = arith.constant 0 : i32
    %c0_i32_1 = arith.constant 0 : i32
    return %c0_i32, %c0_i32_0 : i32, i32
  }
  func.func @transform_3(%arg0: i32) -> (i32, i32) {
    %c0_i32 = arith.constant 0 : i32
    %c0_i32_0 = arith.constant 0 : i32
    %c0_i32_1 = arith.constant 0 : i32
    return %c0_i32, %c0_i32_0 : i32, i32
  }
  func.func @transform_4(%arg0: i32) -> (i32, i32) {
    %c0_i32 = arith.constant 0 : i32
    %c0_i32_0 = arith.constant 0 : i32
    %c0_i32_1 = arith.constant 0 : i32
    return %c0_i32, %c0_i32_0 : i32, i32
  }
  func.func @transform_5(%arg0: i32) -> (i32, i32) {
    %c0_i32 = arith.constant 0 : i32
    %c0_i32_0 = arith.constant 0 : i32
    return %arg0, %c0_i32 : i32, i32
  }
}

</mosaic_0001>

<bundles_post_ra>
// kernel: tpu_custom_call.1
= control target key start
LH: loop header
LB: loop body
LE: loop exit
PB: predicated region body
PF: predicated region fallthrough
CT: control target
= control target key end

     0   :  { %6 = vsyncpa [#allocation3], 0  ;;  %s124_s0 = inlined_call_operand.hbm [shape: f32[8,128], index: 0, kind: input, shape index: {}]   ;;  %s125_s1 = inlined_call_operand.hbm [shape: f32[8,128], index: 1, kind: output, shape index: {}]  }
   0x1   :  { %7 = vsyncpa [#allocation4], 0  ;;  %s88_s6 = smov [#allocation2]   ;;  %s40_s10 = scalar_lea.hbm %s124_s0, 128 }
   0x2   :  { %s14_s7 = sshll.u32 %s88_s6, 4  ;;  %p41_p0 = scmp.ne.s32.totalorder %s124_s0, %s40_s10  ;;  %s15_s7 = int_to_ptr.vmem [resolvable:$true] %s14_s7 }
   0x3   :  { %p44_p1 = scmp.lt.u32.totalorder %s40_s10, %s124_s0 }
   0x5   :  { %p46_p2 = pnand %p44_p1, %p41_p0 }
   0x7   :  { %49 = shalt.err (!%p46_p2)
}
   0x8   :  { %s50_s15 = scalar_lea.vmem %s15_s7, 128  ;;  %p55_p4 = scmp.lt.s32.totalorder %s15_s7, %s15_s7 }
   0x9   :  { %p51_p3 = scmp.ne.s32.totalorder %s15_s7, %s50_s15  ;;  %p56_p5 = scmp.lt.s32.totalorder %s50_s15, %s50_s15 }
   0xb   :  { %p57_p6 = por %p56_p5, %p55_p4 }
   0xd   :  { %p58_p7 = pnand %p57_p6, %p51_p3 }
   0xf   :  { %61 = shalt.err (!%p58_p7)
}
  0x10   :  { %17 = dma.hbm_to_vmem [thread:$0]  %s124_s0, 128, %s15_s7, [#allocation3]  }
  0x11   :  { %84 = dma.done.wait [#allocation3], 128  }
  0x12   :  { %85 = vsyncadd [#allocation3], 4294967168  ;;  %s89_s18 = smov [#allocation5]   ;;  %v21_v0 = vld [vmem:[#allocation2] sm:$0xff] }
  0x13   :  { %s29_s19 = sshll.u32 %s89_s18, 4  ;;  %22 = vst [vmem:[#allocation5] sm:$0xff] %v21_v0  ;;  %s30_s19 = int_to_ptr.vmem [resolvable:$true] %s29_s19 }
  0x14   :  { %s62_s20 = scalar_lea.vmem %s30_s19, 128  ;;  %p67_p9 = scmp.lt.s32.totalorder %s30_s19, %s30_s19 }
  0x15   :  { %p63_p8 = scmp.ne.s32.totalorder %s30_s19, %s62_s20  ;;  %p68_p10 = scmp.lt.s32.totalorder %s62_s20, %s62_s20 }
  0x17   :  { %p69_p11 = por %p68_p10, %p67_p9 }
  0x19   :  { %p70_p12 = pnand %p69_p11, %p63_p8 }
  0x1b   :  { %73 = shalt.err (!%p70_p12)
}
  0x1c   :  { %s74_s23 = scalar_lea.hbm %s125_s1, 128 }
  0x1d   :  { %p75_p13 = scmp.ne.s32.totalorder %s125_s1, %s74_s23  ;;  %p78_p0 = scmp.lt.u32.totalorder %s74_s23, %s125_s1 }
  0x1f   :  { %p80_p1 = pnand %p78_p0, %p75_p13 }
  0x21   :  { %83 = shalt.err (!%p80_p1)
}
  0x22   :  { %32 = dma.vmem_to_hbm [thread:$0]  %s30_s19, 128, %s125_s1, [#allocation4]  }
  0x23   :  { %86 = dma.done.wait [#allocation4], 128  }
  0x24   :  { %87 = vsyncadd [#allocation4], 4294967168 }
  0x25   :  { %36 = vsyncpa [#allocation3], 1 }
  0x26   :  { %37 = vsyncpa [#allocation4], 1 }

// kernel: _forward_fused.1
= control target key start
LH: loop header
LB: loop body
LE: loop exit
PB: predicated region body
PF: predicated region fallthrough
CT: control target
= control target key end

     0   :  { %10 = vsyncpa [#allocation3], 0  ;;  %s554_s0 = inlined_call_operand.vmem [shape: bf16[8,128], index: 0, kind: input, shape index: {}]   ;;  %s555_s1 = inlined_call_operand.hbm [shape: bf16[128,128], index: 1, kind: input, shape index: {}]   ;;  %s556_s2 = inlined_call_operand.vmem [shape: f32[1,128], index: 2, kind: input, shape index: {}]   ;;  %s557_s3 = inlined_call_operand.hbm [shape: bf16[128,128], index: 3, kind: input, shape index: {}]   ;;  %s558_s4 = inlined_call_operand.vmem [shape: f32[1,128], index: 4, kind: input, shape index: {}]   ;;  %s559_s5 = inlined_call_operand.hbm [shape: f32[8,128], index: 5, kind: output, shape index: {}]  }
   0x1   :  { %11 = vsyncpa [#allocation6], 0 }
   0x2   :  { %12 = vsyncpa [#allocation4], 0  ;;  %s472_s18 = smov [#allocation2]   ;;  %s400_s22 = scalar_lea.hbm %s555_s1, 1024 }
   0x3   :  { %s20_s19 = sshll.u32 %s472_s18, 4  ;;  %p401_p0 = scmp.ne.s32.totalorder %s555_s1, %s400_s22  ;;  %s21_s19 = int_to_ptr.vmem [resolvable:$true] %s20_s19 }
   0x4   :  { %p404_p1 = scmp.lt.u32.totalorder %s400_s22, %s555_s1 }
   0x6   :  { %p406_p2 = pnand %p404_p1, %p401_p0 }
   0x8   :  { %409 = shalt.err (!%p406_p2)
}
   0x9   :  { %s410_s27 = scalar_lea.vmem %s21_s19, 1024  ;;  %p415_p4 = scmp.lt.s32.totalorder %s21_s19, %s21_s19 }
   0xa   :  { %p411_p3 = scmp.ne.s32.totalorder %s21_s19, %s410_s27  ;;  %p416_p5 = scmp.lt.s32.totalorder %s410_s27, %s410_s27 }
   0xc   :  { %p417_p6 = por %p416_p5, %p415_p4 }
   0xe   :  { %p418_p7 = pnand %p417_p6, %p411_p3 }
  0x10   :  { %421 = shalt.err (!%p418_p7)
}
  0x11   :  { %s473_s28 = smov 64   ;;  %s474_s29 = smov 4  }
  0x12   :  { %26 = dma.hbm_to_vmem [thread:$0]  %s555_s1, 1024, %s21_s19, [#allocation3], %s473_s28, %s473_s28, %s474_s29  }
  0x13   :  { %s475_s7 = smov [#allocation5]   ;;  %s422_s11 = scalar_lea.hbm %s557_s3, 1024 }
  0x14   :  { %s34_s8 = sshll.u32 %s475_s7, 4  ;;  %p423_p8 = scmp.ne.s32.totalorder %s557_s3, %s422_s11  ;;  %s35_s8 = int_to_ptr.vmem [resolvable:$true] %s34_s8 }
  0x15   :  { %p426_p9 = scmp.lt.u32.totalorder %s422_s11, %s557_s3 }
  0x17   :  { %p428_p10 = pnand %p426_p9, %p423_p8 }
  0x19   :  { %431 = shalt.err (!%p428_p10)
}
  0x1a   :  { %s432_s16 = scalar_lea.vmem %s35_s8, 1024  ;;  %p437_p12 = scmp.lt.s32.totalorder %s35_s8, %s35_s8 }
  0x1b   :  { %p433_p11 = scmp.ne.s32.totalorder %s35_s8, %s432_s16  ;;  %p438_p13 = scmp.lt.s32.totalorder %s432_s16, %s432_s16 }
  0x1d   :  { %p439_p0 = por %p438_p13, %p437_p12 }
  0x1f   :  { %p440_p1 = pnand %p439_p0, %p433_p11 }
  0x21   :  { %443 = shalt.err (!%p440_p1)
}
  0x22   :  { %40 = dma.hbm_to_vmem [thread:$0]  %s557_s3, 1024, %s35_s8, [#allocation6], %s473_s28, %s473_s28, %s474_s29  }
  0x23   :  { %466 = dma.done.wait [#allocation3], 1024  }
  0x24   :  { %467 = vsyncadd [#allocation3], 4294966272 }
  0x25   :  { %468 = dma.done.wait [#allocation6], 1024  }
  0x26   :  { %469 = vsyncadd [#allocation6], 4294966272  ;;  %v476_v0 = vmov 0.0   ;;  %vm477_vm0 = vmmov 0   ;;  %v380_v1 = vld [vmem:[#allocation2] sm:$0xff]   ;;  %v381_v2 = vld [vmem:[#allocation2 + $0x8] sm:$0xff]  }
  0x27   :  { %333 = vmatprep.subr.bf16.mxu0 %v476_v0  ;;  %349 = vmatprep.mubr.msk.bf16.mxu0 %vm477_vm0, %v476_v0  ;;  %v382_v3 = vld [vmem:[#allocation2 + $0x10] sm:$0xff]   ;;  %v388_v4 = vld [vmem:[#allocation5] sm:$0xff]   ;;  %v383_v5 = vld [vmem:[#allocation2 + $0x18] sm:$0xff]  }
  0x28   :  { %353 = vmatprep.subr.bf16.mxu1 %v476_v0  ;;  %369 = vmatprep.mubr.msk.bf16.mxu1 %vm477_vm0, %v476_v0  ;;  %v389_v6 = vld [vmem:[#allocation5 + $0x8] sm:$0xff]   ;;  %v384_v7 = vld [vmem:[#allocation2 + $0x20] sm:$0xff]   ;;  %v390_v8 = vld [vmem:[#allocation5 + $0x10] sm:$0xff]  }
  0x29   :  { %334 = vmatpush3.bf16.msra.mxu0 %v380_v1  ;;  %354 = vmatpush3.bf16.msra.mxu1 %v388_v4  ;;  %v385_v9 = vld [vmem:[#allocation2 + $0x28] sm:$0xff]   ;;  %v386_v10 = vld [vmem:[#allocation2 + $0x30] sm:$0xff]   ;;  %v387_v11 = vld [vmem:[#allocation2 + $0x38] sm:$0xff]  }
  0x2a   :  { %335 = vmatprep.subr.bf16.mxu0 %v476_v0  ;;  %355 = vmatprep.subr.bf16.mxu1 %v476_v0  ;;  %v50_v12 = vld [vmem:[%s554_s0] sm:$0xf]  ;;  %v391_v13 = vld [vmem:[#allocation5 + $0x18] sm:$0xff]   ;;  %v393_v15 = vld [vmem:[#allocation5 + $0x28] sm:$0xff]  }
  0x2b   :  { %v392_v14 = vld [vmem:[#allocation5 + $0x20] sm:$0xff]   ;;  %v394_v16 = vld [vmem:[#allocation5 + $0x30] sm:$0xff]   ;;  %v395_v17 = vld [vmem:[#allocation5 + $0x38] sm:$0xff]  }
  0x2c   :  { %v297_v18 = vld [vmem:[%s556_s2] ss:$0 sm:$0xff]  ;;  %s478_s2 = smov [#allocation7]  }
  0x2d   :  { %336 = vmatpush3.bf16.msra.mxu0 %v381_v2  ;;  %356 = vmatpush3.bf16.msra.mxu1 %v389_v6  ;;  %v306_v28 = vld [vmem:[%s558_s4] ss:$0 sm:$0xff]  ;;  %s287_s22 = sshll.u32 %s478_s2, 4  ;;  %s288_s22 = int_to_ptr.vmem [resolvable:$true] %s287_s22 }
  0x2e   :  { %337 = vmatprep.subr.bf16.mxu0 %v476_v0  ;;  %357 = vmatprep.subr.bf16.mxu1 %v476_v0  ;;  %s444_s23 = scalar_lea.vmem %s288_s22, 128  ;;  %p449_p3 = scmp.lt.s32.totalorder %s288_s22, %s288_s22 }
  0x2f   :  { %p445_p2 = scmp.ne.s32.totalorder %s288_s22, %s444_s23  ;;  %p450_p4 = scmp.lt.s32.totalorder %s444_s23, %s444_s23 }
  0x31   :  { %338 = vmatpush3.bf16.msra.mxu0 %v382_v3  ;;  %358 = vmatpush3.bf16.msra.mxu1 %v390_v8  ;;  %p451_p5 = por %p450_p4, %p449_p3 }
  0x32   :  { %339 = vmatprep.subr.bf16.mxu0 %v476_v0  ;;  %359 = vmatprep.subr.bf16.mxu1 %v476_v0 }
  0x33   :  { %p452_p6 = pnand %p451_p5, %p445_p2 }
  0x35   :  { %340 = vmatpush3.bf16.msra.mxu0 %v383_v5  ;;  %360 = vmatpush3.bf16.msra.mxu1 %v391_v13 }
  0x36   :  { %341 = vmatprep.subr.bf16.mxu0 %v476_v0  ;;  %361 = vmatprep.subr.bf16.mxu1 %v476_v0 }
  0x39   :  { %342 = vmatpush3.bf16.msra.mxu0 %v384_v7  ;;  %362 = vmatpush3.bf16.msra.mxu1 %v392_v14 }
  0x3a   :  { %343 = vmatprep.subr.bf16.mxu0 %v476_v0  ;;  %363 = vmatprep.subr.bf16.mxu1 %v476_v0 }
  0x3d   :  { %344 = vmatpush3.bf16.msra.mxu0 %v385_v9  ;;  %364 = vmatpush3.bf16.msra.mxu1 %v393_v15 }
  0x3e   :  { %345 = vmatprep.subr.bf16.mxu0 %v476_v0  ;;  %365 = vmatprep.subr.bf16.mxu1 %v476_v0 }
  0x41   :  { %346 = vmatpush3.bf16.msra.mxu0 %v386_v10  ;;  %366 = vmatpush3.bf16.msra.mxu1 %v394_v16 }
  0x42   :  { %347 = vmatprep.subr.bf16.mxu0 %v476_v0  ;;  %367 = vmatprep.subr.bf16.mxu1 %v476_v0 }
  0x45   :  { %348 = vmatpush3.bf16.msra.mxu0 %v387_v11  ;;  %368 = vmatpush3.bf16.msra.mxu1 %v395_v17 }
  0x48   :  { %350 = vmatmul.mubr.bf16.vlgmr.msra.gmra.mrb[0].mxu0 %v50_v12 }
 0x11b   :  { %v156_v19 = vpop.f32.mrb[0].mxu0 }
 0x11c   :  { %v157_v20 = vadd.f32 %v297_v18, %v156_v19  ;;  %v351_v21 = vpop.f32.mrb[1].mxu0 }
 0x11d   :  { %v159_v22 = vpop.f32.mrb[2].mxu0 }
 0x11e   :  { %396 = vtanh.f32 %v157_v20  ;;  %v352_v23 = vpop.f32.mrb[3].mxu0 }
 0x128   :  { %v397_v24 = vpop.eup %396 }
 0x129   :  { %v163_v25 = vmul.f32 0.5, %v397_v24 }
 0x12b   :  { %v164_v26 = vadd.f32 0.5, %v163_v25 }
 0x12d   :  { %v165_v27 = vpack.c.bf16 %v164_v26, %v164_v26 }
 0x12f   :  { %370 = vmatmul.mubr.bf16.vlgmr.msra.gmra.mrb[0].mxu1 %v165_v27 }
 0x202   :  { %v271_v29 = vpop.f32.mrb[0].mxu1 }
 0x203   :  { %v272_v30 = vadd.f32 %v306_v28, %v271_v29  ;;  %v371_v31 = vpop.f32.mrb[1].mxu1 }
 0x204   :  { %v274_v32 = vpop.f32.mrb[2].mxu1 }
 0x205   :  { %398 = vtanh.f32 %v272_v30  ;;  %v372_v33 = vpop.f32.mrb[3].mxu1 }
 0x20f   :  { %v399_v34 = vpop.eup %398 }
 0x210   :  { %v278_v35 = vmul.f32 0.5, %v399_v34 }
 0x212   :  { %v279_v36 = vadd.f32 0.5, %v278_v35 }
 0x214   :  { %280 = vst [vmem:[#allocation7] sm:$0xff] %v279_v36 }
 0x215   :  { %455 = shalt.err (!%p452_p6)
}
 0x216   :  { %s456_s25 = scalar_lea.hbm %s559_s5, 128 }
 0x217   :  { %p457_p7 = scmp.ne.s32.totalorder %s559_s5, %s456_s25  ;;  %p460_p8 = scmp.lt.u32.totalorder %s456_s25, %s559_s5 }
 0x219   :  { %p462_p9 = pnand %p460_p8, %p457_p7 }
 0x21b   :  { %465 = shalt.err (!%p462_p9)
}
 0x21c   :  { %290 = dma.vmem_to_hbm [thread:$0]  %s288_s22, 128, %s559_s5, [#allocation4]  }
 0x21d   :  { %470 = dma.done.wait [#allocation4], 128  }
 0x21e   :  { %471 = vsyncadd [#allocation4], 4294967168 }
 0x21f   :  { %294 = vsyncpa [#allocation3], 1 }
 0x220   :  { %295 = vsyncpa [#allocation6], 1 }
 0x221   :  { %296 = vsyncpa [#allocation4], 1 }

</bundles_post_ra>
